<compile_context>
chip_gen: v6e
topology: v6e:2x2x1
jax: 0.10.0
libtpu: 0.0.40
codegen_flags: <defaults>
</compile_context>

<pallas_src>
import functools

import jax
import jax.numpy as jnp
from jax.experimental import pallas as pl
from jax.experimental.pallas import tpu as pltpu


def _attention_kernel(x_ref, m_ref, b_ref, v_ref, t_ref,
                      out_ref, alpha_ref, *, delta):
    # x_ref:     (TB, L, H)  block of batch elements
    # m_ref:     (A, H)      m_context (untransposed)
    # b_ref:     (1, A)      b_context
    # v_ref:     (T, A)      topic embeddings (untransposed)
    # t_ref:     (TB, T)     topic proportions for this block
    # out_ref:   (TB, H)
    # alpha_ref: (TB, L)
    TB, L, H = x_ref.shape
    A = m_ref.shape[0]
    T = v_ref.shape[0]

    x3 = x_ref[...]                       # [TB, L, H]
    x2 = x3.reshape(TB * L, H)            # [TB*L, H] (merge leading dims only)

    # u = tanh(x @ m^T + b): one MXU matmul over all TB*L rows, contracting H
    # directly against m_context's H axis (no wrapper-side transpose).
    u = jnp.tanh(
        jax.lax.dot_general(
            x2, m_ref[...],
            dimension_numbers=(((1,), (1,)), ((), ())),
            preferred_element_type=jnp.float32)
        + b_ref[...])                      # [TB*L, A]

    # s = u @ v^T, contracting A directly.
    s = jax.lax.dot_general(
        u, v_ref[...],
        dimension_numbers=(((1,), (1,)), ((), ())),
        preferred_element_type=jnp.float32)            # [TB*L, T]
    s3 = s.reshape(TB, L, T)                           # [TB, L, T]

    # softmax over the sequence axis L (torch dim=1), per batch / topic.
    smax = jnp.max(s3, axis=1, keepdims=True)          # [TB, 1, T]
    e = jnp.exp(s3 - smax)                             # [TB, L, T]
    denom = jnp.sum(e, axis=1, keepdims=True)          # [TB, 1, T]
    # EUP approx reciprocal (co-issues freely) + one Newton step -> ~f32 exact.
    r = pl.reciprocal(denom, approx=True)
    r = r * (2.0 - denom * r)
    a = e * r                                          # [TB, L, T]

    # alpha_b = a_b @ (t_b - delta): VPU multiply + lane reduction over T
    # (avoid an N=1 MXU push for these tiny tiles).
    theta = t_ref[...] - delta                         # [TB, T]
    alpha = jnp.sum(a * theta[:, None, :], axis=-1)    # [TB, L]

    # out_b = alpha_b @ x_b: VPU multiply + sublane reduction over L
    # (avoid an M=1 MXU push).
    out = jnp.sum(alpha[:, :, None] * x3, axis=1)      # [TB, H]

    out_ref[...] = out.astype(out_ref.dtype)
    alpha_ref[...] = alpha.astype(alpha_ref.dtype)


def attention_layer_forward(x, v, t, m_context, b_context, delta,
                            *, block_b=None):
    """Pallas wrapper. x: [B, L, H], v: [T, A], t: [B, T],
    m_context: [A, H], b_context: [A]."""
    B, L, H = x.shape
    T, A = v.shape
    assert m_context.shape == (A, H)
    assert t.shape == (B, T)

    # Batch-block size: whole batch if small, else a sublane-aligned chunk of 8
    # so the (block_b, *) output blocks satisfy the (8, 128) tiling rule.
    if block_b is None:
        block_b = B if B <= 8 else 8

    # Pad B up to a multiple of block_b; padded rows are discarded afterwards.
    Bp = ((B + block_b - 1) // block_b) * block_b
    if Bp != B:
        x = jnp.pad(x, ((0, Bp - B), (0, 0), (0, 0)))
        t = jnp.pad(t, ((0, Bp - B), (0, 0)))

    b2 = b_context.reshape(1, A)
    kernel = functools.partial(_attention_kernel, delta=float(delta))

    # TODO(synk): for very large L, add an L-tiling grid axis ("arbitrary")
    # with an online-softmax accumulator and re-derive block_b against the
    # v7x 64 MiB VMEM budget (vmem_limit_bytes).
    out, alpha = pl.pallas_call(
        kernel,
        out_shape=(
            jax.ShapeDtypeStruct((Bp, H), x.dtype),
            jax.ShapeDtypeStruct((Bp, L), x.dtype),
        ),
        grid_spec=pltpu.PrefetchScalarGridSpec(
            num_scalar_prefetch=0,
            grid=(Bp // block_b,),
            in_specs=[
                pl.BlockSpec((block_b, L, H), lambda b: (b, 0, 0)),  # x
                pl.BlockSpec((A, H), lambda b: (0, 0)),              # m_context
                pl.BlockSpec((1, A), lambda b: (0, 0)),              # b_context
                pl.BlockSpec((T, A), lambda b: (0, 0)),              # v
                pl.BlockSpec((block_b, T), lambda b: (b, 0)),        # t
            ],
            out_specs=[
                pl.BlockSpec((block_b, H), lambda b: (b, 0)),        # out
                pl.BlockSpec((block_b, L), lambda b: (b, 0)),        # alpha
            ],
        ),
        compiler_params=pltpu.CompilerParams(
            dimension_semantics=("parallel",)),
    )(x, m_context, b2, v, t)
    return out[:B], alpha[:B]


def attention_layer_reference(x, v, t, m_context, b_context, delta):
    """Pure-JAX reference mirroring the PyTorch forward."""
    u = jnp.tanh(jnp.einsum("blh,ah->bla", x, m_context) + b_context)  # [B,L,A]
    s = jnp.einsum("bla,ta->blt", u, v)                                # [B,L,T]
    a = jax.nn.softmax(s, axis=1)                                      # over L
    theta = (t - delta)[:, None, :]                                    # [B,1,T]
    alpha = jnp.einsum("blt,bqt->blq", a, theta)                       # [B,L,1]
    out = jnp.einsum("blq,blh->bqh", alpha, x)[:, 0, :]                # [B,H]
    return out, alpha[..., 0]


if __name__ == "__main__":
    # Small shapes consistent with the module's forward signature.
    B, L, H = 2, 8, 32          # batch, seq_len, in_dim
    A, T = 16, 8                # attention_dim (== topic embedding dim), n_topics
    delta = 0.01

    key = jax.random.PRNGKey(0)
    kx, kv, kt, km = jax.random.split(key, 4)

    x = jax.random.normal(kx, (B, L, H), dtype=jnp.float32)
    v = jax.random.normal(kv, (T, A), dtype=jnp.float32)
    t = jax.nn.softmax(jax.random.normal(kt, (B, T), dtype=jnp.float32), axis=-1)

    # Deterministic parameter init matching param_init():
    #   m_context ~ normal, b_context = zeros.
    m_context = jax.random.normal(km, (A, H), dtype=jnp.float32)
    b_context = jnp.zeros((A,), dtype=jnp.float32)

    out, alpha = attention_layer_forward(x, v, t, m_context, b_context, delta)
    out = jax.block_until_ready(out)
    alpha = jax.block_until_ready(alpha)

    out_ref, alpha_ref = attention_layer_reference(
        x, v, t, m_context, b_context, delta)

    assert jnp.allclose(out, out_ref, atol=1e-3, rtol=1e-3), "out mismatch"
    assert jnp.allclose(alpha, alpha_ref, atol=1e-3, rtol=1e-3), "alpha mismatch"

    print("KERNEL_OK")
</pallas_src>

<mosaic_0001>
module attributes {stable_mosaic.version = 11 : i64} {
  func.func @_attention_kernel(%arg0: i32, %arg1: memref<2x8x32xf32, #tpu.memory_space<vmem>>, %arg2: memref<16x32xf32, #tpu.memory_space<vmem>>, %arg3: memref<1x16xf32, #tpu.memory_space<vmem>>, %arg4: memref<8x16xf32, #tpu.memory_space<vmem>>, %arg5: memref<2x8xf32, #tpu.memory_space<vmem>>, %arg6: memref<2x32xf32, #tpu.memory_space<vmem>>, %arg7: memref<2x8xf32, #tpu.memory_space<vmem>>) attributes {dimension_semantics = [#tpu.dimension_semantics<parallel>], iteration_bounds = array<i64: 1>, scalar_prefetch = 0 : i64, scratch_operands = 0 : i64, tpu.core_type = #tpu.core_type<tc>, window_params = [{transform_indices = @transform_0, window_bounds = array<i64: 2, 8, 32>}, {pipeline_mode = #tpu.pipeline_mode<synchronous>, transform_indices = @transform_1, window_bounds = array<i64: 16, 32>}, {pipeline_mode = #tpu.pipeline_mode<synchronous>, transform_indices = @transform_2, window_bounds = array<i64: 1, 16>}, {pipeline_mode = #tpu.pipeline_mode<synchronous>, transform_indices = @transform_3, window_bounds = array<i64: 8, 16>}, {transform_indices = @transform_4, window_bounds = array<i64: 2, 8>}, {transform_indices = @transform_5, window_bounds = array<i64: 2, 32>}, {transform_indices = @transform_6, window_bounds = array<i64: 2, 8>}]} {
    %c0 = arith.constant 0 : index
    %c0_0 = arith.constant 0 : index
    %c0_1 = arith.constant 0 : index
    %0 = vector.load %arg1[%c0, %c0_0, %c0_1] : memref<2x8x32xf32, #tpu.memory_space<vmem>>, vector<2x8x32xf32>
    %1 = vector.shape_cast %0 : vector<2x8x32xf32> to vector<16x32xf32>
    %c0_2 = arith.constant 0 : index
    %c0_3 = arith.constant 0 : index
    %2 = vector.load %arg2[%c0_2, %c0_3] : memref<16x32xf32, #tpu.memory_space<vmem>>, vector<16x32xf32>
    %cst = arith.constant dense<0.000000e+00> : vector<16x16xf32>
    %3 = tpu.matmul %1, %2, %cst {dimension_numbers = #tpu.dot_dimension_numbers<[1], [1], [0], [0], [0, 0, 1, 0], [], []>} : vector<16x32xf32>, vector<16x32xf32>, vector<16x16xf32> -> vector<16x16xf32>
    %c0_4 = arith.constant 0 : index
    %c0_5 = arith.constant 0 : index
    %4 = vector.load %arg3[%c0_4, %c0_5] : memref<1x16xf32, #tpu.memory_space<vmem>>, vector<1x16xf32>
    %5 = vector.broadcast %4 : vector<1x16xf32> to vector<16x16xf32>
    %6 = arith.addf %3, %5 : vector<16x16xf32>
    %7 = math.tanh %6 : vector<16x16xf32>
    %c0_6 = arith.constant 0 : index
    %c0_7 = arith.constant 0 : index
    %8 = vector.load %arg4[%c0_6, %c0_7] : memref<8x16xf32, #tpu.memory_space<vmem>>, vector<8x16xf32>
    %cst_8 = arith.constant dense<0.000000e+00> : vector<16x8xf32>
    %9 = tpu.matmul %7, %8, %cst_8 {dimension_numbers = #tpu.dot_dimension_numbers<[1], [1], [0], [0], [0, 0, 1, 0], [], []>} : vector<16x16xf32>, vector<8x16xf32>, vector<16x8xf32> -> vector<16x8xf32>
    %10 = vector.shape_cast %9 : vector<16x8xf32> to vector<2x8x8xf32>
    %cst_9 = arith.constant dense<0xFF800000> : vector<2x8xf32>
    %11 = vector.multi_reduction <maximumf>, %10, %cst_9 [1] : vector<2x8x8xf32> to vector<2x8xf32>
    %12 = vector.shape_cast %11 : vector<2x8xf32> to vector<2x1x8xf32>
    %13 = vector.broadcast %12 : vector<2x1x8xf32> to vector<2x8x8xf32>
    %14 = arith.subf %10, %13 : vector<2x8x8xf32>
    %15 = math.exp %14 : vector<2x8x8xf32>
    %cst_10 = arith.constant dense<0.000000e+00> : vector<2x8xf32>
    %16 = vector.multi_reduction <add>, %15, %cst_10 [1] : vector<2x8x8xf32> to vector<2x8xf32>
    %17 = vector.shape_cast %16 : vector<2x8xf32> to vector<2x1x8xf32>
    %18 = tpu.reciprocal %17 {approx = true} : vector<2x1x8xf32> -> vector<2x1x8xf32>
    %19 = arith.mulf %17, %18 : vector<2x1x8xf32>
    %cst_11 = arith.constant 2.000000e+00 : f32
    %20 = vector.broadcast %cst_11 : f32 to vector<2x1x8xf32>
    %21 = arith.subf %20, %19 : vector<2x1x8xf32>
    %22 = arith.mulf %18, %21 : vector<2x1x8xf32>
    %23 = vector.broadcast %22 : vector<2x1x8xf32> to vector<2x8x8xf32>
    %24 = arith.mulf %15, %23 : vector<2x8x8xf32>
    %c0_12 = arith.constant 0 : index
    %c0_13 = arith.constant 0 : index
    %25 = vector.load %arg5[%c0_12, %c0_13] : memref<2x8xf32, #tpu.memory_space<vmem>>, vector<2x8xf32>
    %cst_14 = arith.constant 0.00999999977 : f32
    %26 = vector.broadcast %cst_14 : f32 to vector<2x8xf32>
    %27 = arith.subf %25, %26 : vector<2x8xf32>
    %28 = vector.shape_cast %27 : vector<2x8xf32> to vector<2x1x8xf32>
    %29 = vector.broadcast %28 : vector<2x1x8xf32> to vector<2x8x8xf32>
    %30 = arith.mulf %24, %29 : vector<2x8x8xf32>
    %cst_15 = arith.constant dense<0.000000e+00> : vector<2x8xf32>
    %31 = vector.multi_reduction <add>, %30, %cst_15 [2] : vector<2x8x8xf32> to vector<2x8xf32>
    %32 = vector.shape_cast %31 : vector<2x8xf32> to vector<2x8x1xf32>
    %33 = vector.broadcast %32 : vector<2x8x1xf32> to vector<2x8x32xf32>
    %34 = arith.mulf %33, %0 : vector<2x8x32xf32>
    %cst_16 = arith.constant dense<0.000000e+00> : vector<2x32xf32>
    %35 = vector.multi_reduction <add>, %34, %cst_16 [1] : vector<2x8x32xf32> to vector<2x32xf32>
    %c0_17 = arith.constant 0 : index
    %c0_18 = arith.constant 0 : index
    %36 = vector.load %arg6[%c0_17, %c0_18] : memref<2x32xf32, #tpu.memory_space<vmem>>, vector<2x32xf32>
    tpu.vector_store %arg6[%c0_17, %c0_18], %35 {strides = array<i32>} : memref<2x32xf32, #tpu.memory_space<vmem>>, vector<2x32xf32>,
    %c0_19 = arith.constant 0 : index
    %c0_20 = arith.constant 0 : index
    %37 = vector.load %arg7[%c0_19, %c0_20] : memref<2x8xf32, #tpu.memory_space<vmem>>, vector<2x8xf32>
    tpu.vector_store %arg7[%c0_19, %c0_20], %31 {strides = array<i32>} : memref<2x8xf32, #tpu.memory_space<vmem>>, vector<2x8xf32>,
    return
  }
  func.func @transform_0(%arg0: i32) -> (i32, i32, i32) {
    %c0_i32 = arith.constant 0 : i32
    %c0_i32_0 = arith.constant 0 : i32
    %c0_i32_1 = arith.constant 0 : i32
    return %arg0, %c0_i32, %c0_i32_0 : i32, i32, i32
  }
  func.func @transform_1(%arg0: i32) -> (i32, i32) {
    %c0_i32 = arith.constant 0 : i32
    %c0_i32_0 = arith.constant 0 : i32
    %c0_i32_1 = arith.constant 0 : i32
    return %c0_i32, %c0_i32_0 : i32, i32
  }
  func.func @transform_2(%arg0: i32) -> (i32, i32) {
    %c0_i32 = arith.constant 0 : i32
    %c0_i32_0 = arith.constant 0 : i32
    %c0_i32_1 = arith.constant 0 : i32
    return %c0_i32, %c0_i32_0 : i32, i32
  }
  func.func @transform_3(%arg0: i32) -> (i32, i32) {
    %c0_i32 = arith.constant 0 : i32
    %c0_i32_0 = arith.constant 0 : i32
    %c0_i32_1 = arith.constant 0 : i32
    return %c0_i32, %c0_i32_0 : i32, i32
  }
  func.func @transform_4(%arg0: i32) -> (i32, i32) {
    %c0_i32 = arith.constant 0 : i32
    %c0_i32_0 = arith.constant 0 : i32
    return %arg0, %c0_i32 : i32, i32
  }
  func.func @transform_5(%arg0: i32) -> (i32, i32) {
    %c0_i32 = arith.constant 0 : i32
    %c0_i32_0 = arith.constant 0 : i32
    return %arg0, %c0_i32 : i32, i32
  }
  func.func @transform_6(%arg0: i32) -> (i32, i32) {
    %c0_i32 = arith.constant 0 : i32
    %c0_i32_0 = arith.constant 0 : i32
    return %arg0, %c0_i32 : i32, i32
  }
}

</mosaic_0001>

<bundles_post_ra>
// kernel: tpu_custom_call.1
= control target key start
LH: loop header
LB: loop body
LE: loop exit
PB: predicated region body
PF: predicated region fallthrough
CT: control target
= control target key end

     0   :  { %12 = vsyncpa [#allocation3], 0  ;;  %s660_s0 = inlined_call_operand.hbm [shape: f32[2,8,32], index: 0, kind: input, shape index: {}]   ;;  %s661_s1 = inlined_call_operand.hbm [shape: f32[16,32], index: 1, kind: input, shape index: {}]   ;;  %s662_s2 = inlined_call_operand.vmem [shape: f32[1,16], index: 2, kind: input, shape index: {}]   ;;  %s663_s3 = inlined_call_operand.hbm [shape: f32[8,16], index: 3, kind: input, shape index: {}]   ;;  %s664_s4 = inlined_call_operand.vmem [shape: f32[2,8], index: 4, kind: input, shape index: {}]   ;;  %s665_s5 = inlined_call_operand.hbm [shape: f32[2,32], index: 5, kind: output, shape index: {0}]   ;;  %s666_s6 = inlined_call_operand.hbm [shape: f32[2,8], index: 6, kind: output, shape index: {1}]  }
   0x1   :  { %13 = vsyncpa [#allocation6], 0 }
   0x2   :  { %14 = vsyncpa [#allocation4], 0 }
   0x3   :  { %15 = vsyncpa [#allocation10], 0  ;;  %s563_s21 = smov [#allocation5]   ;;  %s564_s23 = smov [#allocation2]  }
   0x4   :  { %s33_s22 = sshll.u32 %s563_s21, 4  ;;  %s21_s24 = sshll.u32 %s564_s23, 4  ;;  %s34_s22 = int_to_ptr.vmem [resolvable:$true] %s33_s22  ;;  %s22_s24 = int_to_ptr.vmem [resolvable:$true] %s21_s24 }
   0x5   :  { %s463_s25 = scalar_lea.vmem %s34_s22, 256  ;;  %p468_p1 = scmp.lt.s32.totalorder %s34_s22, %s34_s22 }
   0x6   :  { %p464_p0 = scmp.ne.s32.totalorder %s34_s22, %s463_s25  ;;  %p469_p2 = scmp.lt.s32.totalorder %s463_s25, %s463_s25 }
   0x8   :  { %p470_p3 = por %p469_p2, %p468_p1 }
   0xa   :  { %p471_p4 = pnand %p470_p3, %p464_p0 }
   0xc   :  { %474 = shalt.err (!%p471_p4)
}
   0xd   :  { %s565_s26 = smov 128   ;;  %s566_s27 = smov 8  }
   0xe   :  { %39 = dma.hbm_to_vmem [thread:$0]  %s661_s1, 256, %s34_s22, [#allocation6], %s565_s26, %s565_s26, %s566_s27  }
   0xf   :  { %s483_s30 = scalar_lea.vmem %s22_s24, 256  ;;  %p488_p6 = scmp.lt.s32.totalorder %s22_s24, %s22_s24 }
  0x10   :  { %p484_p5 = scmp.ne.s32.totalorder %s22_s24, %s483_s30  ;;  %p489_p7 = scmp.lt.s32.totalorder %s483_s30, %s483_s30 }
  0x12   :  { %p490_p8 = por %p489_p7, %p488_p6 }
  0x14   :  { %p491_p9 = pnand %p490_p8, %p484_p5 }
  0x16   :  { %494 = shalt.err (!%p491_p9)
}
  0x17   :  { %27 = dma.hbm_to_vmem [thread:$0]  %s660_s0, 256, %s22_s24, [#allocation3], %s565_s26, %s565_s26, %s566_s27  }
  0x18   :  { %s567_s9 = smov [#allocation7]  }
  0x19   :  { %s48_s10 = sshll.u32 %s567_s9, 4  ;;  %s49_s10 = int_to_ptr.vmem [resolvable:$true] %s48_s10 }
  0x1a   :  { %s503_s11 = scalar_lea.vmem %s49_s10, 128  ;;  %p508_p11 = scmp.lt.s32.totalorder %s49_s10, %s49_s10 }
  0x1b   :  { %p504_p10 = scmp.ne.s32.totalorder %s49_s10, %s503_s11  ;;  %p509_p12 = scmp.lt.s32.totalorder %s503_s11, %s503_s11 }
  0x1d   :  { %p510_p13 = por %p509_p12, %p508_p11 }
  0x1f   :  { %p511_p0 = pnand %p510_p13, %p504_p10 }
  0x21   :  { %514 = shalt.err (!%p511_p0)
}
  0x22   :  { %51 = dma.hbm_to_vmem [thread:$0]  %s663_s3, 128, %s49_s10, [#allocation6]  }
  0x23   :  { %555 = dma.done.wait [#allocation3], 256  }
  0x24   :  { %556 = vsyncadd [#allocation3], 4294967040 }
  0x25   :  { %557 = dma.done.wait [#allocation6], 384  }
  0x26   :  { %558 = vsyncadd [#allocation6], 4294966912  ;;  %vm74_vm0 = vcmask 261120   ;;  %v66_v0 = vld [vmem:[#allocation5 + $0x8] sm:$0xff]  ;;  %v65_v1 = vld [vmem:[#allocation5] sm:$0xff]  ;;  %vm165_vm1 = vcmask 130048   ;;  %v301_v12 = vlaneseq }
  0x27   :  { %v615_v2 = vld [vmem:[#allocation2] sm:$0xff]  ;;  %423 = vmatprep.subr.msk.mxu0 %vm74_vm0, %v66_v0  ;;  %v623_v3 = vld [vmem:[#allocation2 + $0x8] sm:$0xff]  ;;  %vm250_vm2 = vcmask 64512   ;;  %v568_v50 = vmov 1966171168   ;;  %vm356_vm3 = vcmask 1041409  }
  0x28   :  { %427 = vmatprep.mubr.msk.f32.mxu0 %vm74_vm0, %v615_v2  ;;  %424 = vmatpush3.xpose.msk.msra.mxu0 %vm74_vm0, %v66_v0  ;;  %v164_v4 = vld [vmem:[#allocation7] sm:$0xff]  ;;  %v630_v13 = vshrl.u32 %v301_v12, 7  ;;  %v364_v14 = vand.u32 127, %v301_v12  ;;  %v299_v51 = vunpack.c.l.s4 %v568_v50  ;;  %vm375_vm4 = vcmask 58368  }
  0x29   :  { %425 = vmatprep.subr.msk.mxu0 %vm74_vm0, %v65_v1  ;;  %430 = vmatprep.subr.msk.mxu1 %vm165_vm1, %v164_v4  ;;  %v407_v5 = vld [vmem:[%s662_s2] ss:$0 sm:$0xff] }
  0x2a   :  { %431 = vmatpush3.xpose.msk.msra.mxu1 %vm165_vm1, %v164_v4  ;;  %v633_v15 = vsub.s32 %v364_v14, %v630_v13  ;;  %v300_v54 = vunpack.c.0.s8 %v299_v51  ;;  %v295_v55 = vld [vmem:[%s664_s4] sm:$0x3]  ;;  %s569_s4 = smov [#allocation9]  }
  0x2b   :  { %v415_v56 = vadd.f32 -0.01, %v295_v55  ;;  %s393_s14 = sshll.u32 %s569_s4, 4  ;;  %s394_s14 = int_to_ptr.vmem [resolvable:$true] %s393_s14 }
  0x2c   :  { %426 = vmatpush3.xpose.msk.msra.mxu0 %vm74_vm0, %v65_v1  ;;  %v303_v57 = vsub.s32 %v300_v54, %v630_v13  ;;  %s515_s15 = scalar_lea.vmem %s394_s14, 32  ;;  %p520_p2 = scmp.lt.s32.totalorder %s394_s14, %s394_s14 }
  0x2d   :  { %p516_p1 = scmp.ne.s32.totalorder %s394_s14, %s515_s15  ;;  %p521_p3 = scmp.lt.s32.totalorder %s515_s15, %s515_s15 }
  0x2e   :  { %v304_v58 = vrot.slane %v415_v56, %v303_v57 }
  0x2f   :  { %428 = vmatmul.mubr.msk.f32.vlgmr.msra.gmra.mxu0 %vm74_vm0, %v623_v3  ;;  %p522_p4 = por %p521_p3, %p520_p2 }
  0x30   :  { %v305_v61 = vcombine.high %v304_v58, %v304_v58  ;;  %v312_v0 = vrot.slane %v304_v58, %v303_v57 }
  0x31   :  { %p523_p5 = pnand %p522_p4, %p516_p1 }
  0xef   :  { %v429_v6 = vpop.f32.mrf.mxu0 }
  0xf0   :  { %v159_v7 = vadd.f32 %v429_v6, %v407_v5 }
  0xf1   :  { %v153_v8 = vpop.f32.mrf.mxu0 }
  0xf2   :  { %v154_v9 = vadd.f32 %v407_v5, %v153_v8  ;;  %v322_v5 = vsub.s32 0, %v630_v13 }
  0xf4   :  { %443 = vtanh.f32 %v154_v9  ;;  %v323_v9 = vrot.slane %v312_v0, %v322_v5 }
  0xf5   :  { %445 = vtanh.f32 %v159_v7  ;;  %v319_v7 = vrot.slane %v305_v61, %v303_v57 }
  0xf7   :  { %v327_v12 = vrot.slane %v319_v7, %v322_v5 }
 0x101   :  { %v444_v10 = vpop.eup %443 }
 0x102   :  { %v446_v11 = vpop.eup %445  ;;  %432 = vmatprep.mubr.msk.f32.mxu1 %vm165_vm1, %v444_v10 }
 0x103   :  { %433 = vmatmul.mubr.msk.f32.vlgmr.msra.gmra.mxu1 %vm165_vm1, %v446_v11 }
 0x1c3   :  { %v434_v16 = vpop.f32.mrf.mxu1 }
 0x1c4   :  { %v258_v17 = vsel %vm250_vm2, %v434_v16, -inf }
 0x1c5   :  { %v259_v18 = vrot.slane %v258_v17, 4  ;;  %v241_v19 = vpop.f32.mrf.mxu1 }
 0x1c6   :  { %v251_v20 = vsel %vm250_vm2, %v241_v19, -inf }
 0x1c7   :  { %v260_v21 = vmax.f32 %v258_v17, %v259_v18  ;;  %v252_v22 = vrot.slane %v251_v20, 4 }
 0x1c9   :  { %v261_v23 = vrot.slane %v260_v21, 2  ;;  %v253_v24 = vmax.f32 %v251_v20, %v252_v22 }
 0x1cb   :  { %v262_v25 = vmax.f32 %v260_v21, %v261_v23  ;;  %v254_v26 = vrot.slane %v253_v24, 2 }
 0x1cd   :  { %v263_v27 = vrot.slane %v262_v25, 1  ;;  %v255_v28 = vmax.f32 %v253_v24, %v254_v26 }
 0x1cf   :  { %v264_v29 = vmax.f32 %v262_v25, %v263_v27  ;;  %v256_v30 = vrot.slane %v255_v28, 1 }
 0x1d1   :  { %v266_v31 = vsub.f32 %v434_v16, %v264_v29  ;;  %v257_v32 = vmax.f32 %v255_v28, %v256_v30 }
 0x1d3   :  { %v269_v33 = vmul.f32 1.442695, %v266_v31  ;;  %v265_v34 = vsub.f32 %v241_v19, %v257_v32 }
 0x1d5   :  { %447 = vpow2.f32 %v269_v33  ;;  %v267_v35 = vmul.f32 1.442695, %v265_v34 }
 0x1d7   :  { %449 = vpow2.f32 %v267_v35 }
 0x1e2   :  { %v448_v36 = vpop.eup %447 }
 0x1e3   :  { %v278_v37 = vsel %vm250_vm2, %v448_v36, 0.0 }
 0x1e4   :  { %v450_v38 = vpop.eup %449  ;;  %v279_v39 = vrot.slane %v278_v37, 4 }
 0x1e5   :  { %v271_v40 = vsel %vm250_vm2, %v450_v38, 0.0 }
 0x1e6   :  { %v272_v41 = vrot.slane %v271_v40, 4  ;;  %v280_v42 = vadd.f32 %v279_v39, %v278_v37 }
 0x1e8   :  { %v273_v43 = vadd.f32 %v272_v41, %v271_v40  ;;  %v281_v44 = vrot.slane %v280_v42, 2 }
 0x1ea   :  { %v274_v45 = vrot.slane %v273_v43, 2  ;;  %v282_v46 = vadd.f32 %v281_v44, %v280_v42 }
 0x1ec   :  { %v275_v47 = vadd.f32 %v274_v45, %v273_v43  ;;  %v283_v48 = vrot.slane %v282_v46, 1 }
 0x1ee   :  { %v276_v49 = vrot.slane %v275_v47, 1  ;;  %v284_v52 = vadd.f32 %v283_v48, %v282_v46 }
 0x1f0   :  { %v277_v53 = vadd.f32 %v276_v49, %v275_v47  ;;  %451 = vrcp.f32 %v284_v52 }
 0x1f2   :  { %453 = vrcp.f32 %v277_v53 }
 0x1fd   :  { %v452_v59 = vpop.eup %451 }
 0x1fe   :  { %v288_v60 = vmul.f32 %v452_v59, %v284_v52 }
 0x1ff   :  { %v454_v62 = vpop.eup %453 }
 0x200   :  { %v287_v63 = vmul.f32 %v454_v62, %v277_v53  ;;  %v290_v1 = vsub.f32 2.0, %v288_v60 }
 0x202   :  { %v289_v4 = vsub.f32 2.0, %v287_v63  ;;  %v292_v6 = vmul.f32 %v452_v59, %v290_v1 }
 0x204   :  { %v291_v8 = vmul.f32 %v454_v62, %v289_v4  ;;  %v294_v11 = vmul.f32 %v448_v36, %v292_v6 }
 0x206   :  { %v293_v10 = vmul.f32 %v450_v38, %v291_v8  ;;  %v331_v17 = vmul.f32 %v327_v12, %v294_v11 }
 0x208   :  { %v330_v14 = vmul.f32 %v323_v9, %v293_v10  ;;  %v335_v18 = vsel %vm250_vm2, %v331_v17, 0.0 }
 0x20a   :  { %v332_v16 = vsel %vm250_vm2, %v330_v14, 0.0 }
 0x20b   :  { %333 = vadd.xlane.f32.xlu0 %v332_v16 }
 0x20f   :  { %336 = vadd.xlane.f32.xlu0 %v335_v18 }
 0x294   :  { %v334_v19 = vpop.xlane.xlu0 %333 }
 0x295   :  { %v338_v20 = vmul.f32 %v334_v19, %v615_v2  ;;  %v368_v23 = vrot.slane %v334_v19, %v633_v15 }
 0x297   :  { %v340_v13 = vsel %vm74_vm0, %v338_v20, 0.0 }
 0x298   :  { %v341_v21 = vrot.slane %v340_v13, 4  ;;  %v337_v22 = vpop.xlane.xlu0 %336 }
 0x299   :  { %v339_v24 = vmul.f32 %v337_v22, %v623_v3  ;;  %v372_v25 = vrot.slane %v337_v22, %v633_v15 }
 0x29a   :  { %v342_v26 = vadd.f32 %v341_v21, %v340_v13 }
 0x29b   :  { %v347_v27 = vsel %vm74_vm0, %v339_v24, 0.0  ;;  %v373_v2 = vsel %vm356_vm3, %v372_v25, %v368_v23 }
 0x29c   :  { %v343_v28 = vrot.slane %v342_v26, 2  ;;  %v348_v29 = vrot.slane %v347_v27, 4  ;;  %376 = vst.msk [vmem:[#allocation9] sm:$0x3] %vm375_vm4, %v373_v2 }
 0x29d   :  { %526 = shalt.err (!%p523_p5)
}
 0x29e   :  { %396 = dma.vmem_to_hbm [thread:$0]  %s394_s14, 32, %s666_s6, [#allocation10]   ;;  %v344_v3 = vadd.f32 %v343_v28, %v342_v26  ;;  %v349_v15 = vadd.f32 %v348_v29, %v347_v27  ;;  %vm359_vm5 = vcmask 254976  }
 0x29f   :  { %s570_s18 = smov [#allocation8]  }
 0x2a0   :  { %v350_v30 = vrot.slane %v349_v15, 2  ;;  %v345_v31 = vrot.slane %v344_v3, 1  ;;  %s383_s19 = sshll.u32 %s570_s18, 4  ;;  %s384_s19 = int_to_ptr.vmem [resolvable:$true] %s383_s19 }
 0x2a1   :  { %s535_s20 = scalar_lea.vmem %s384_s19, 32  ;;  %p540_p7 = scmp.lt.s32.totalorder %s384_s19, %s384_s19 }
 0x2a2   :  { %v351_v32 = vadd.f32 %v350_v30, %v349_v15  ;;  %v346_v35 = vadd.f32 %v345_v31, %v344_v3  ;;  %p536_p6 = scmp.ne.s32.totalorder %s384_s19, %s535_s20  ;;  %p541_p8 = scmp.lt.s32.totalorder %s535_s20, %s535_s20 }
 0x2a4   :  { %v352_v33 = vrot.slane %v351_v32, 1  ;;  %p542_p9 = por %p541_p8, %p540_p7 }
 0x2a6   :  { %v353_v34 = vadd.f32 %v352_v33, %v351_v32  ;;  %p543_p10 = pnand %p542_p9, %p536_p6 }
 0x2a8   :  { %v357_v36 = vsel %vm356_vm3, %v353_v34, %v346_v35 }
 0x2a9   :  { %360 = vst.msk [vmem:[#allocation8] sm:$0x3] %vm359_vm5, %v357_v36 }
 0x2aa   :  { %546 = shalt.err (!%p543_p10)
}
 0x2ab   :  { %386 = dma.vmem_to_hbm [thread:$0]  %s384_s19, 32, %s665_s5, [#allocation4]  }
 0x2ac   :  { %559 = dma.done.wait [#allocation4], 32  }
 0x2ad   :  { %560 = vsyncadd [#allocation4], 4294967264 }
 0x2ae   :  { %561 = dma.done.wait [#allocation10], 32  }
 0x2af   :  { %562 = vsyncadd [#allocation10], 4294967264 }
 0x2b0   :  { %403 = vsyncpa [#allocation3], 1 }
 0x2b1   :  { %404 = vsyncpa [#allocation6], 1 }
 0x2b2   :  { %405 = vsyncpa [#allocation4], 1 }
 0x2b3   :  { %406 = vsyncpa [#allocation10], 1 }

</bundles_post_ra>
